<compile_context>
chip_gen: v6e
topology: v6e:2x2x1
jax: 0.10.0
libtpu: 0.0.40
codegen_flags: <defaults>
</compile_context>

<pallas_src>
import jax
import jax.numpy as jnp
from jax.experimental import pallas as pl
from jax.experimental.pallas import tpu as pltpu

EPS = 1e-5


def temporal_resblock_kernel(x_ref, w_ref, b_ref, g_ref, beta_ref, o_ref):
    """One (block_b, N) batch tile: time-mix matmul + residual + per-row LayerNorm."""
    x_in = x_ref[...]                                    # (Bt, N), bf16 or f32

    # Whole-tile time-mixing as a single lane-dense MXU matmul.
    # bf16 inputs go straight to the MXU; accumulation is forced to f32.
    y = jnp.dot(x_in, w_ref[...], preferred_element_type=jnp.float32)
    y = y + b_ref[...].astype(jnp.float32)               # (Bt, N)

    # Residual in f32.
    z = x_in.astype(jnp.float32) + y

    # Per-row (= per batch element) LayerNorm over the flattened (L, C) slab.
    # One-pass statistics (sum, sum-of-squares), f32 accumulation.
    inv_n = jnp.float32(1.0 / z.shape[-1])
    mean = jnp.sum(z, axis=-1, keepdims=True) * inv_n
    mean_sq = jnp.sum(z * z, axis=-1, keepdims=True) * inv_n
    var = mean_sq - mean * mean
    inv = jax.lax.rsqrt(var + EPS)

    out = (z - mean) * inv * g_ref[...].astype(jnp.float32) \
        + beta_ref[...].astype(jnp.float32)
    o_ref[...] = out.astype(o_ref.dtype)


def prepare_temporal_resblock_params(w, bias, gamma, beta, *,
                                     compute_dtype=jnp.bfloat16):
    """Once-per-step parameter expansion (hoist out of the per-call path).

    Wt_big[t*C+c', l*C+c] = W[l, t] * delta(c, c'); x2 @ Wt_big applies W along
    the time axis while keeping the flattened lane-dense (B, L*C) layout.
    """
    L, C = gamma.shape
    N = L * C
    # TODO(synk): for C >= 128 the kron expansion inflates weight bytes / MXU
    # FLOPs by a factor of C; switch to per-batch (L,L)@(L,C) matmuls there.
    eye_c = jnp.eye(C, dtype=w.dtype)
    wt_big = jnp.kron(w.T, eye_c).astype(compute_dtype)          # (N, N)
    bias_big = jnp.repeat(bias, C).reshape(1, N).astype(jnp.float32)
    gamma2 = gamma.reshape(1, N).astype(jnp.float32)
    beta2 = beta.reshape(1, N).astype(jnp.float32)
    return wt_big, bias_big, gamma2, beta2


def _choose_block_b(b_pad, cap=1024):
    """Largest multiple-of-8 divisor of b_pad that is <= cap; prefer >= 2 steps."""
    block_b = min(cap, b_pad)
    while b_pad % block_b:
        block_b -= 8
    # v7x megacore: make the "parallel" grid axis shardable across 2 TCs.
    if b_pad // block_b == 1 and b_pad >= 16:
        cand = (b_pad // 2) // 8 * 8
        while cand >= 8 and b_pad % cand:
            cand -= 8
        if cand >= 8:
            block_b = cand
    return block_b


def _in_specs(block_b, n, single_buffer_consts):
    x_spec = pl.BlockSpec((block_b, n), lambda i: (i, 0))
    const_specs = []
    for shp in [(n, n), (1, n), (1, n), (1, n)]:
        if single_buffer_consts:
            const_specs.append(
                pl.BlockSpec(shp, lambda i: (0, 0), pipeline_mode=pl.Buffered(1)))
        else:
            const_specs.append(pl.BlockSpec(shp, lambda i: (0, 0)))
    return [x_spec] + const_specs


def temporal_resblock(x, w, bias, gamma, beta, *,
                      compute_dtype=jnp.bfloat16, out_dtype=None,
                      block_b=None, prepped=None):
    """x: (B, L, C); w: (L, L); bias: (L,); gamma, beta: (L, C)."""
    B, L, C = x.shape
    N = L * C
    out_dtype = x.dtype if out_dtype is None else out_dtype

    if prepped is None:
        prepped = prepare_temporal_resblock_params(
            w, bias, gamma, beta, compute_dtype=compute_dtype)
    wt_big, bias_big, gamma2, beta2 = prepped

    # Flatten (L, C) into a lane-dense last dimension and pad batch to a
    # multiple of 8 (padded rows are independent under the per-row LayerNorm
    # and are sliced off afterwards).
    x2 = x.reshape(B, N).astype(compute_dtype)
    B_pad = ((B + 7) // 8) * 8
    if B_pad != B:
        x2 = jnp.pad(x2, ((0, B_pad - B), (0, 0)))

    if block_b is None:
        block_b = _choose_block_b(B_pad)
    grid = (B_pad // block_b,)

    # Need-based scoped-VMEM limit (covers v5e's 16 MiB default if tiles grow).
    isz = lambda dt: jnp.dtype(dt).itemsize
    tile_bytes = block_b * N * (isz(compute_dtype) + isz(out_dtype))
    weight_bytes = N * N * isz(compute_dtype)
    param_bytes = 3 * N * 4
    vmem_need = 2 * tile_bytes + 2 * weight_bytes + 2 * param_bytes
    vmem_limit = int(max(vmem_need + (4 << 20), 16 << 20))

    def _run(single_buffer_consts):
        return pl.pallas_call(
            temporal_resblock_kernel,
            out_shape=jax.ShapeDtypeStruct((B_pad, N), out_dtype),
            grid_spec=pltpu.PrefetchScalarGridSpec(
                num_scalar_prefetch=0,
                grid=grid,
                in_specs=_in_specs(block_b, N, single_buffer_consts),
                out_specs=pl.BlockSpec((block_b, N), lambda i: (i, 0)),
            ),
            compiler_params=pltpu.CompilerParams(
                dimension_semantics=("parallel",),
                vmem_limit_bytes=vmem_limit),
        )(x2, wt_big, bias_big, gamma2, beta2)

    try:
        # Constant-index operands single-buffered (their index_map never changes).
        out2 = _run(True)
    except Exception:
        # Fallback: default (double) buffering if Buffered(1) is not supported.
        out2 = _run(False)

    return out2[:B].reshape(B, L, C)


def temporal_resblock_ref(x, w, bias, gamma, beta):
    # Pure-JAX reference mirroring the PyTorch forward.
    y = jnp.einsum("lt,btc->blc", w, x) + bias[None, :, None]
    z = x + y
    mean = jnp.mean(z, axis=(1, 2), keepdims=True)
    var = jnp.mean((z - mean) ** 2, axis=(1, 2), keepdims=True)
    return (z - mean) / jnp.sqrt(var + EPS) * gamma[None] + beta[None]


if __name__ == "__main__":
    B, L, C = 2, 8, 32   # batch, input_len, input_size

    key = jax.random.PRNGKey(0)
    kx, kw, kb, kg, kbeta = jax.random.split(key, 5)

    x = jax.random.normal(kx, (B, L, C), dtype=jnp.float32)
    # Deterministic synthetic parameters (shapes from nn.Linear(L, L) and
    # nn.LayerNorm([L, C])); not loaded from a checkpoint.
    w = jax.random.normal(kw, (L, L), dtype=jnp.float32) * (1.0 / jnp.sqrt(L))
    bias = jax.random.normal(kb, (L,), dtype=jnp.float32) * 0.1
    gamma = 1.0 + 0.1 * jax.random.normal(kg, (L, C), dtype=jnp.float32)
    beta = 0.1 * jax.random.normal(kbeta, (L, C), dtype=jnp.float32)

    ref = temporal_resblock_ref(x, w, bias, gamma, beta)

    # Exact-precision path (f32 I/O) -- tight check against the reference.
    out_f32 = temporal_resblock(x, w, bias, gamma, beta,
                                compute_dtype=jnp.float32)
    jax.block_until_ready(out_f32)
    assert out_f32.shape == (B, L, C)
    assert jnp.allclose(out_f32, ref, atol=1e-4, rtol=1e-4), "f32 mismatch vs reference"

    # Fast path: bf16 x / weight on the wire and into the MXU (f32 accumulation
    # and f32 LayerNorm stats inside the kernel); looser tolerance for bf16
    # input rounding.
    prepped = prepare_temporal_resblock_params(w, bias, gamma, beta,
                                               compute_dtype=jnp.bfloat16)
    out_bf16 = temporal_resblock(x, w, bias, gamma, beta,
                                 compute_dtype=jnp.bfloat16, prepped=prepped)
    jax.block_until_ready(out_bf16)
    assert out_bf16.shape == (B, L, C)
    assert jnp.allclose(out_bf16, ref, atol=5e-2, rtol=5e-2), "bf16 mismatch vs reference"

    print("KERNEL_OK")
</pallas_src>

<mosaic_0001>
module attributes {stable_mosaic.version = 11 : i64} {
  func.func @temporal_resblock_kernel(%arg0: i32, %arg1: memref<8x256xf32, #tpu.memory_space<vmem>>, %arg2: memref<256x256xf32, #tpu.memory_space<vmem>>, %arg3: memref<1x256xf32, #tpu.memory_space<vmem>>, %arg4: memref<1x256xf32, #tpu.memory_space<vmem>>, %arg5: memref<1x256xf32, #tpu.memory_space<vmem>>, %arg6: memref<8x256xf32, #tpu.memory_space<vmem>>) attributes {dimension_semantics = [#tpu.dimension_semantics<parallel>], iteration_bounds = array<i64: 1>, scalar_prefetch = 0 : i64, scratch_operands = 0 : i64, tpu.core_type = #tpu.core_type<tc>, window_params = [{transform_indices = @transform_0, window_bounds = array<i64: 8, 256>}, {pipeline_mode = #tpu.pipeline_mode<synchronous>, transform_indices = @transform_1, window_bounds = array<i64: 256, 256>}, {pipeline_mode = #tpu.pipeline_mode<synchronous>, transform_indices = @transform_2, window_bounds = array<i64: 1, 256>}, {pipeline_mode = #tpu.pipeline_mode<synchronous>, transform_indices = @transform_3, window_bounds = array<i64: 1, 256>}, {pipeline_mode = #tpu.pipeline_mode<synchronous>, transform_indices = @transform_4, window_bounds = array<i64: 1, 256>}, {transform_indices = @transform_5, window_bounds = array<i64: 8, 256>}]} {
    %c0 = arith.constant 0 : index
    %c0_0 = arith.constant 0 : index
    %0 = vector.load %arg1[%c0, %c0_0] : memref<8x256xf32, #tpu.memory_space<vmem>>, vector<8x256xf32>
    %c0_1 = arith.constant 0 : index
    %c0_2 = arith.constant 0 : index
    %1 = vector.load %arg2[%c0_1, %c0_2] : memref<256x256xf32, #tpu.memory_space<vmem>>, vector<256x256xf32>
    %cst = arith.constant dense<0.000000e+00> : vector<8x256xf32>
    %2 = tpu.matmul %0, %1, %cst {dimension_numbers = #tpu.dot_dimension_numbers<[1], [0], [0], [1], [0, 0, 1, 1], [], []>} : vector<8x256xf32>, vector<256x256xf32>, vector<8x256xf32> -> vector<8x256xf32>
    %c0_3 = arith.constant 0 : index
    %c0_4 = arith.constant 0 : index
    %3 = vector.load %arg3[%c0_3, %c0_4] : memref<1x256xf32, #tpu.memory_space<vmem>>, vector<1x256xf32>
    %4 = vector.broadcast %3 : vector<1x256xf32> to vector<8x256xf32>
    %5 = arith.addf %2, %4 : vector<8x256xf32>
    %6 = arith.addf %0, %5 : vector<8x256xf32>
    %cst_5 = arith.constant dense<0.000000e+00> : vector<8xf32>
    %7 = vector.multi_reduction <add>, %6, %cst_5 [1] : vector<8x256xf32> to vector<8xf32>
    %8 = vector.shape_cast %7 : vector<8xf32> to vector<8x1xf32>
    %cst_6 = arith.constant 3.906250e-03 : f32
    %9 = vector.broadcast %cst_6 : f32 to vector<8x1xf32>
    %10 = arith.mulf %8, %9 : vector<8x1xf32>
    %11 = arith.mulf %6, %6 : vector<8x256xf32>
    %cst_7 = arith.constant dense<0.000000e+00> : vector<8xf32>
    %12 = vector.multi_reduction <add>, %11, %cst_7 [1] : vector<8x256xf32> to vector<8xf32>
    %13 = vector.shape_cast %12 : vector<8xf32> to vector<8x1xf32>
    %cst_8 = arith.constant 3.906250e-03 : f32
    %14 = vector.broadcast %cst_8 : f32 to vector<8x1xf32>
    %15 = arith.mulf %13, %14 : vector<8x1xf32>
    %16 = arith.mulf %10, %10 : vector<8x1xf32>
    %17 = arith.subf %15, %16 : vector<8x1xf32>
    %cst_9 = arith.constant 9.99999974E-6 : f32
    %18 = vector.broadcast %cst_9 : f32 to vector<8x1xf32>
    %19 = arith.addf %17, %18 : vector<8x1xf32>
    %20 = math.rsqrt %19 : vector<8x1xf32>
    %21 = vector.broadcast %10 : vector<8x1xf32> to vector<8x256xf32>
    %22 = arith.subf %6, %21 : vector<8x256xf32>
    %23 = vector.broadcast %20 : vector<8x1xf32> to vector<8x256xf32>
    %24 = arith.mulf %22, %23 : vector<8x256xf32>
    %c0_10 = arith.constant 0 : index
    %c0_11 = arith.constant 0 : index
    %25 = vector.load %arg4[%c0_10, %c0_11] : memref<1x256xf32, #tpu.memory_space<vmem>>, vector<1x256xf32>
    %26 = vector.broadcast %25 : vector<1x256xf32> to vector<8x256xf32>
    %27 = arith.mulf %24, %26 : vector<8x256xf32>
    %c0_12 = arith.constant 0 : index
    %c0_13 = arith.constant 0 : index
    %28 = vector.load %arg5[%c0_12, %c0_13] : memref<1x256xf32, #tpu.memory_space<vmem>>, vector<1x256xf32>
    %29 = vector.broadcast %28 : vector<1x256xf32> to vector<8x256xf32>
    %30 = arith.addf %27, %29 : vector<8x256xf32>
    %c0_14 = arith.constant 0 : index
    %c0_15 = arith.constant 0 : index
    %31 = vector.load %arg6[%c0_14, %c0_15] : memref<8x256xf32, #tpu.memory_space<vmem>>, vector<8x256xf32>
    tpu.vector_store %arg6[%c0_14, %c0_15], %30 {strides = array<i32>} : memref<8x256xf32, #tpu.memory_space<vmem>>, vector<8x256xf32>,
    return
  }
  func.func @transform_0(%arg0: i32) -> (i32, i32) {
    %c0_i32 = arith.constant 0 : i32
    %c0_i32_0 = arith.constant 0 : i32
    return %arg0, %c0_i32 : i32, i32
  }
  func.func @transform_1(%arg0: i32) -> (i32, i32) {
    %c0_i32 = arith.constant 0 : i32
    %c0_i32_0 = arith.constant 0 : i32
    %c0_i32_1 = arith.constant 0 : i32
    return %c0_i32, %c0_i32_0 : i32, i32
  }
  func.func @transform_2(%arg0: i32) -> (i32, i32) {
    %c0_i32 = arith.constant 0 : i32
    %c0_i32_0 = arith.constant 0 : i32
    %c0_i32_1 = arith.constant 0 : i32
    return %c0_i32, %c0_i32_0 : i32, i32
  }
  func.func @transform_3(%arg0: i32) -> (i32, i32) {
    %c0_i32 = arith.constant 0 : i32
    %c0_i32_0 = arith.constant 0 : i32
    %c0_i32_1 = arith.constant 0 : i32
    return %c0_i32, %c0_i32_0 : i32, i32
  }
  func.func @transform_4(%arg0: i32) -> (i32, i32) {
    %c0_i32 = arith.constant 0 : i32
    %c0_i32_0 = arith.constant 0 : i32
    %c0_i32_1 = arith.constant 0 : i32
    return %c0_i32, %c0_i32_0 : i32, i32
  }
  func.func @transform_5(%arg0: i32) -> (i32, i32) {
    %c0_i32 = arith.constant 0 : i32
    %c0_i32_0 = arith.constant 0 : i32
    return %arg0, %c0_i32 : i32, i32
  }
}

module attributes {stable_mosaic.version = 11 : i64} {
  func.func @temporal_resblock_kernel(%arg0: i32, %arg1: memref<8x256xf32, #tpu.memory_space<vmem>>, %arg2: memref<256x256xf32, #tpu.memory_space<vmem>>, %arg3: memref<1x256xf32, #tpu.memory_space<vmem>>, %arg4: memref<1x256xf32, #tpu.memory_space<vmem>>, %arg5: memref<1x256xf32, #tpu.memory_space<vmem>>, %arg6: memref<8x256xf32, #tpu.memory_space<vmem>>) attributes {dimension_semantics = [#tpu.dimension_semantics<parallel>], iteration_bounds = array<i64: 1>, scalar_prefetch = 0 : i64, scratch_operands = 0 : i64, tpu.core_type = #tpu.core_type<tc>, window_params = [{transform_indices = @transform_0, window_bounds = array<i64: 8, 256>}, {pipeline_mode = #tpu.pipeline_mode<synchronous>, transform_indices = @transform_1, window_bounds = array<i64: 256, 256>}, {pipeline_mode = #tpu.pipeline_mode<synchronous>, transform_indices = @transform_2, window_bounds = array<i64: 1, 256>}, {pipeline_mode = #tpu.pipeline_mode<synchronous>, transform_indices = @transform_3, window_bounds = array<i64: 1, 256>}, {pipeline_mode = #tpu.pipeline_mode<synchronous>, transform_indices = @transform_4, window_bounds = array<i64: 1, 256>}, {transform_indices = @transform_5, window_bounds = array<i64: 8, 256>}]} {
    %c0 = arith.constant 0 : index
    %c0_0 = arith.constant 0 : index
    %0 = vector.load %arg1[%c0, %c0_0] : memref<8x256xf32, #tpu.memory_space<vmem>>, vector<8x256xf32>
    %c0_1 = arith.constant 0 : index
    %c0_2 = arith.constant 0 : index
    %1 = vector.load %arg2[%c0_1, %c0_2] : memref<256x256xf32, #tpu.memory_space<vmem>>, vector<256x256xf32>
    %cst = arith.constant dense<0.000000e+00> : vector<8x256xf32>
    %2 = tpu.matmul %0, %1, %cst {dimension_numbers = #tpu.dot_dimension_numbers<[1], [0], [0], [1], [0, 0, 1, 1], [], []>} : vector<8x256xf32>, vector<256x256xf32>, vector<8x256xf32> -> vector<8x256xf32>
    %c0_3 = arith.constant 0 : index
    %c0_4 = arith.constant 0 : index
    %3 = vector.load %arg3[%c0_3, %c0_4] : memref<1x256xf32, #tpu.memory_space<vmem>>, vector<1x256xf32>
    %4 = vector.broadcast %3 : vector<1x256xf32> to vector<8x256xf32>
    %5 = arith.addf %2, %4 : vector<8x256xf32>
    %6 = arith.addf %0, %5 : vector<8x256xf32>
    %cst_5 = arith.constant dense<0.000000e+00> : vector<8xf32>
    %7 = vector.multi_reduction <add>, %6, %cst_5 [1] : vector<8x256xf32> to vector<8xf32>
    %8 = vector.shape_cast %7 : vector<8xf32> to vector<8x1xf32>
    %cst_6 = arith.constant 3.906250e-03 : f32
    %9 = vector.broadcast %cst_6 : f32 to vector<8x1xf32>
    %10 = arith.mulf %8, %9 : vector<8x1xf32>
    %11 = arith.mulf %6, %6 : vector<8x256xf32>
    %cst_7 = arith.constant dense<0.000000e+00> : vector<8xf32>
    %12 = vector.multi_reduction <add>, %11, %cst_7 [1] : vector<8x256xf32> to vector<8xf32>
    %13 = vector.shape_cast %12 : vector<8xf32> to vector<8x1xf32>
    %cst_8 = arith.constant 3.906250e-03 : f32
    %14 = vector.broadcast %cst_8 : f32 to vector<8x1xf32>
    %15 = arith.mulf %13, %14 : vector<8x1xf32>
    %16 = arith.mulf %10, %10 : vector<8x1xf32>
    %17 = arith.subf %15, %16 : vector<8x1xf32>
    %cst_9 = arith.constant 9.99999974E-6 : f32
    %18 = vector.broadcast %cst_9 : f32 to vector<8x1xf32>
    %19 = arith.addf %17, %18 : vector<8x1xf32>
    %20 = math.rsqrt %19 : vector<8x1xf32>
    %21 = vector.broadcast %10 : vector<8x1xf32> to vector<8x256xf32>
    %22 = arith.subf %6, %21 : vector<8x256xf32>
    %23 = vector.broadcast %20 : vector<8x1xf32> to vector<8x256xf32>
    %24 = arith.mulf %22, %23 : vector<8x256xf32>
    %c0_10 = arith.constant 0 : index
    %c0_11 = arith.constant 0 : index
    %25 = vector.load %arg4[%c0_10, %c0_11] : memref<1x256xf32, #tpu.memory_space<vmem>>, vector<1x256xf32>
    %26 = vector.broadcast %25 : vector<1x256xf32> to vector<8x256xf32>
    %27 = arith.mulf %24, %26 : vector<8x256xf32>
    %c0_12 = arith.constant 0 : index
    %c0_13 = arith.constant 0 : index
    %28 = vector.load %arg5[%c0_12, %c0_13] : memref<1x256xf32, #tpu.memory_space<vmem>>, vector<1x256xf32>
    %29 = vector.broadcast %28 : vector<1x256xf32> to vector<8x256xf32>
    %30 = arith.addf %27, %29 : vector<8x256xf32>
    %c0_14 = arith.constant 0 : index
    %c0_15 = arith.constant 0 : index
    %31 = vector.load %arg6[%c0_14, %c0_15] : memref<8x256xf32, #tpu.memory_space<vmem>>, vector<8x256xf32>
    tpu.vector_store %arg6[%c0_14, %c0_15], %30 {strides = array<i32>} : memref<8x256xf32, #tpu.memory_space<vmem>>, vector<8x256xf32>,
    return
  }
  func.func @transform_0(%arg0: i32) -> (i32, i32) {
    %c0_i32 = arith.constant 0 : i32
    %c0_i32_0 = arith.constant 0 : i32
    return %arg0, %c0_i32 : i32, i32
  }
  func.func @transform_1(%arg0: i32) -> (i32, i32) {
    %c0_i32 = arith.constant 0 : i32
    %c0_i32_0 = arith.constant 0 : i32
    %c0_i32_1 = arith.constant 0 : i32
    return %c0_i32, %c0_i32_0 : i32, i32
  }
  func.func @transform_2(%arg0: i32) -> (i32, i32) {
    %c0_i32 = arith.constant 0 : i32
    %c0_i32_0 = arith.constant 0 : i32
    %c0_i32_1 = arith.constant 0 : i32
    return %c0_i32, %c0_i32_0 : i32, i32
  }
  func.func @transform_3(%arg0: i32) -> (i32, i32) {
    %c0_i32 = arith.constant 0 : i32
    %c0_i32_0 = arith.constant 0 : i32
    %c0_i32_1 = arith.constant 0 : i32
    return %c0_i32, %c0_i32_0 : i32, i32
  }
  func.func @transform_4(%arg0: i32) -> (i32, i32) {
    %c0_i32 = arith.constant 0 : i32
    %c0_i32_0 = arith.constant 0 : i32
    %c0_i32_1 = arith.constant 0 : i32
    return %c0_i32, %c0_i32_0 : i32, i32
  }
  func.func @transform_5(%arg0: i32) -> (i32, i32) {
    %c0_i32 = arith.constant 0 : i32
    %c0_i32_0 = arith.constant 0 : i32
    return %arg0, %c0_i32 : i32, i32
  }
}

</mosaic_0001>

<bundles_post_ra>
// kernel: tpu_custom_call.1
= control target key start
LH: loop header
LB: loop body
LE: loop exit
PB: predicated region body
PF: predicated region fallthrough
CT: control target
= control target key end

     0   :  { %10 = vsyncpa [#allocation3], 0  ;;  %s392_s0 = inlined_call_operand.hbm [shape: f32[8,256], index: 0, kind: input, shape index: {}]   ;;  %s393_s1 = inlined_call_operand.hbm [shape: f32[256,256], index: 1, kind: input, shape index: {}]   ;;  %s394_s2 = inlined_call_operand.vmem [shape: f32[1,256], index: 2, kind: input, shape index: {}]   ;;  %s395_s3 = inlined_call_operand.vmem [shape: f32[1,256], index: 3, kind: input, shape index: {}]   ;;  %s396_s4 = inlined_call_operand.vmem [shape: f32[1,256], index: 4, kind: input, shape index: {}]   ;;  %s397_s5 = inlined_call_operand.hbm [shape: f32[8,256], index: 5, kind: output, shape index: {}]  }
   0x1   :  { %11 = vsyncpa [#allocation6], 0 }
   0x2   :  { %12 = vsyncpa [#allocation4], 0  ;;  %s335_s18 = smov [#allocation2]   ;;  %s336_s20 = smov [#allocation5]  }
   0x3   :  { %s19_s19 = sshll.u32 %s335_s18, 4  ;;  %s28_s21 = sshll.u32 %s336_s20, 4  ;;  %s20_s19 = int_to_ptr.vmem [resolvable:$true] %s19_s19  ;;  %s29_s21 = int_to_ptr.vmem [resolvable:$true] %s28_s21 }
   0x4   :  { %s277_s22 = scalar_lea.vmem %s20_s19, 256  ;;  %p282_p1 = scmp.lt.s32.totalorder %s20_s19, %s20_s19 }
   0x5   :  { %p278_p0 = scmp.ne.s32.totalorder %s20_s19, %s277_s22  ;;  %p283_p2 = scmp.lt.s32.totalorder %s277_s22, %s277_s22 }
   0x7   :  { %p284_p3 = por %p283_p2, %p282_p1 }
   0x9   :  { %p285_p4 = pnand %p284_p3, %p278_p0 }
   0xb   :  { %288 = shalt.err (!%p285_p4)
}
   0xc   :  { %22 = dma.hbm_to_vmem [thread:$0]  %s392_s0, 256, %s20_s19, [#allocation3]  }
   0xd   :  { %s297_s25 = scalar_lea.vmem %s29_s21, 8192  ;;  %p302_p6 = scmp.lt.s32.totalorder %s29_s21, %s29_s21 }
   0xe   :  { %p298_p5 = scmp.ne.s32.totalorder %s29_s21, %s297_s25  ;;  %p303_p7 = scmp.lt.s32.totalorder %s297_s25, %s297_s25 }
  0x10   :  { %p304_p8 = por %p303_p7, %p302_p6 }
  0x12   :  { %p305_p9 = pnand %p304_p8, %p298_p5 }
  0x14   :  { %308 = shalt.err (!%p305_p9)
}
  0x15   :  { %s337_s26 = smov 256   ;;  %s338_s27 = smov 16  }
  0x16   :  { %34 = dma.hbm_to_vmem [thread:$0]  %s393_s1, 8192, %s29_s21, [#allocation6], %s337_s26, %s337_s26, %s338_s27  }
  0x17   :  { %329 = dma.done.wait [#allocation3], 256  }
  0x18   :  { %330 = vsyncadd [#allocation3], 4294967040 }
  0x19   :  { %331 = dma.done.wait [#allocation6], 8192  }
  0x1a   :  { %332 = vsyncadd [#allocation6], 4294959104  ;;  %v80_v0 = vld [vmem:[#allocation5 + $0xf8] sm:$0xff]  ;;  %v79_v1 = vld [vmem:[#allocation5 + $0xf0] sm:$0xff]  ;;  %s339_s8 = smov [#allocation7]  }
  0x1b   :  { %v78_v2 = vld [vmem:[#allocation5 + $0xe8] sm:$0xff]  ;;  %125 = vmatprep.subr.mxu0 %v80_v0  ;;  %v77_v3 = vld [vmem:[#allocation5 + $0xe0] sm:$0xff]  ;;  %v76_v4 = vld [vmem:[#allocation5 + $0xd8] sm:$0xff]  ;;  %s252_s9 = sshll.u32 %s339_s8, 4  ;;  %s253_s9 = int_to_ptr.vmem [resolvable:$true] %s252_s9 }
  0x1c   :  { %126 = vmatpush1.msra.mxu0 %v79_v1  ;;  %v75_v5 = vld [vmem:[#allocation5 + $0xd0] sm:$0xff]  ;;  %v74_v6 = vld [vmem:[#allocation5 + $0xc8] sm:$0xff]  ;;  %v73_v7 = vld [vmem:[#allocation5 + $0xc0] sm:$0xff]  ;;  %p314_p11 = scmp.lt.s32.totalorder %s253_s9, %s253_s9 }
  0x1d   :  { %127 = vmatprep.subr.mxu0 %v78_v2  ;;  %v72_v8 = vld [vmem:[#allocation5 + $0xb8] sm:$0xff]  ;;  %v71_v9 = vld [vmem:[#allocation5 + $0xb0] sm:$0xff]  ;;  %v70_v10 = vld [vmem:[#allocation5 + $0xa8] sm:$0xff]  ;;  %v115_v2 = vlaneseq }
  0x1e   :  { %128 = vmatpush1.msra.mxu0 %v77_v3  ;;  %v69_v11 = vld [vmem:[#allocation5 + $0xa0] sm:$0xff]  ;;  %v68_v12 = vld [vmem:[#allocation5 + $0x98] sm:$0xff]  ;;  %v67_v13 = vld [vmem:[#allocation5 + $0x90] sm:$0xff] }
  0x1f   :  { %129 = vmatprep.subr.mxu0 %v76_v4  ;;  %v66_v14 = vld [vmem:[#allocation5 + $0x88] sm:$0xff]  ;;  %v65_v15 = vld [vmem:[#allocation5 + $0x80] sm:$0xff]  ;;  %v64_v16 = vld [vmem:[#allocation5 + $0x78] sm:$0xff]  ;;  %v116_v3 = vshrl.u32 %v115_v2, 7 }
  0x20   :  { %130 = vmatpush1.msra.mxu0 %v75_v5  ;;  %v63_v17 = vld [vmem:[#allocation5 + $0x70] sm:$0xff]  ;;  %v62_v18 = vld [vmem:[#allocation5 + $0x68] sm:$0xff]  ;;  %v61_v19 = vld [vmem:[#allocation5 + $0x60] sm:$0xff] }
  0x21   :  { %131 = vmatprep.subr.mxu0 %v74_v6  ;;  %v60_v20 = vld [vmem:[#allocation5 + $0x58] sm:$0xff]  ;;  %v59_v21 = vld [vmem:[#allocation5 + $0x50] sm:$0xff]  ;;  %v58_v22 = vld [vmem:[#allocation5 + $0x48] sm:$0xff]  ;;  %v117_v4 = vsub.s32 0, %v116_v3  ;;  %v121_v6 = vsub.s32 1, %v116_v3 }
  0x22   :  { %132 = vmatpush1.msra.mxu0 %v73_v7  ;;  %v57_v23 = vld [vmem:[#allocation5 + $0x40] sm:$0xff]  ;;  %v376_v24 = vld [vmem:[#allocation2 + $0x8] sm:$0xff]  ;;  %v55_v26 = vld [vmem:[#allocation5 + $0x30] sm:$0xff] }
  0x23   :  { %133 = vmatprep.subr.mxu0 %v72_v8  ;;  %v56_v25 = vld [vmem:[#allocation5 + $0x38] sm:$0xff]  ;;  %189 = vmatprep.mubr.f32.mxu0 %v376_v24  ;;  %v54_v27 = vld [vmem:[#allocation5 + $0x28] sm:$0xff]  ;;  %v53_v28 = vld [vmem:[#allocation5 + $0x20] sm:$0xff] }
  0x24   :  { %134 = vmatpush1.msra.mxu0 %v71_v9  ;;  %v52_v29 = vld [vmem:[#allocation5 + $0x18] sm:$0xff]  ;;  %v51_v30 = vld [vmem:[#allocation5 + $0x10] sm:$0xff]  ;;  %v50_v31 = vld [vmem:[#allocation5 + $0x8] sm:$0xff] }
  0x25   :  { %135 = vmatprep.subr.mxu0 %v70_v10  ;;  %v49_v32 = vld [vmem:[#allocation5] sm:$0xff]  ;;  %v112_v33 = vld [vmem:[#allocation5 + $0x1f8] sm:$0xff]  ;;  %v111_v34 = vld [vmem:[#allocation5 + $0x1f0] sm:$0xff] }
  0x26   :  { %136 = vmatpush1.msra.mxu0 %v69_v11  ;;  %v110_v35 = vld [vmem:[#allocation5 + $0x1e8] sm:$0xff]  ;;  %v109_v36 = vld [vmem:[#allocation5 + $0x1e0] sm:$0xff]  ;;  %v108_v37 = vld [vmem:[#allocation5 + $0x1d8] sm:$0xff] }
  0x27   :  { %137 = vmatprep.subr.mxu0 %v68_v12  ;;  %v107_v38 = vld [vmem:[#allocation5 + $0x1d0] sm:$0xff]  ;;  %v106_v39 = vld [vmem:[#allocation5 + $0x1c8] sm:$0xff]  ;;  %v105_v40 = vld [vmem:[#allocation5 + $0x1c0] sm:$0xff] }
  0x28   :  { %138 = vmatpush1.msra.mxu0 %v67_v13  ;;  %v104_v41 = vld [vmem:[#allocation5 + $0x1b8] sm:$0xff]  ;;  %v103_v42 = vld [vmem:[#allocation5 + $0x1b0] sm:$0xff]  ;;  %v102_v43 = vld [vmem:[#allocation5 + $0x1a8] sm:$0xff] }
  0x29   :  { %139 = vmatprep.subr.mxu0 %v66_v14  ;;  %v101_v44 = vld [vmem:[#allocation5 + $0x1a0] sm:$0xff]  ;;  %v100_v45 = vld [vmem:[#allocation5 + $0x198] sm:$0xff]  ;;  %v99_v46 = vld [vmem:[#allocation5 + $0x190] sm:$0xff] }
  0x2a   :  { %140 = vmatpush1.msra.mxu0 %v65_v15  ;;  %v98_v47 = vld [vmem:[#allocation5 + $0x188] sm:$0xff]  ;;  %v97_v48 = vld [vmem:[#allocation5 + $0x180] sm:$0xff]  ;;  %v96_v49 = vld [vmem:[#allocation5 + $0x178] sm:$0xff] }
  0x2b   :  { %141 = vmatprep.subr.mxu0 %v64_v16  ;;  %v95_v50 = vld [vmem:[#allocation5 + $0x170] sm:$0xff]  ;;  %v94_v51 = vld [vmem:[#allocation5 + $0x168] sm:$0xff]  ;;  %v93_v52 = vld [vmem:[#allocation5 + $0x160] sm:$0xff] }
  0x2c   :  { %142 = vmatpush1.msra.mxu0 %v63_v17  ;;  %v92_v53 = vld [vmem:[#allocation5 + $0x158] sm:$0xff]  ;;  %v91_v54 = vld [vmem:[#allocation5 + $0x150] sm:$0xff]  ;;  %v90_v55 = vld [vmem:[#allocation5 + $0x148] sm:$0xff] }
  0x2d   :  { %143 = vmatprep.subr.mxu0 %v62_v18  ;;  %v89_v56 = vld [vmem:[#allocation5 + $0x140] sm:$0xff]  ;;  %v88_v57 = vld [vmem:[#allocation5 + $0x138] sm:$0xff]  ;;  %v87_v58 = vld [vmem:[#allocation5 + $0x130] sm:$0xff] }
  0x2e   :  { %144 = vmatpush1.msra.mxu0 %v61_v19  ;;  %v86_v59 = vld [vmem:[#allocation5 + $0x128] sm:$0xff]  ;;  %v85_v60 = vld [vmem:[#allocation5 + $0x120] sm:$0xff]  ;;  %v84_v61 = vld [vmem:[#allocation5 + $0x118] sm:$0xff] }
  0x2f   :  { %145 = vmatprep.subr.mxu0 %v60_v20  ;;  %v83_v62 = vld [vmem:[#allocation5 + $0x110] sm:$0xff]  ;;  %v82_v63 = vld [vmem:[#allocation5 + $0x108] sm:$0xff]  ;;  %v81_v0 = vld [vmem:[#allocation5 + $0x100] sm:$0xff] }
  0x30   :  { %146 = vmatpush1.msra.mxu0 %v59_v21  ;;  %v47_v1 = vld [vmem:[#allocation2] sm:$0xff] }
  0x31   :  { %147 = vmatprep.subr.mxu0 %v58_v22  ;;  %v113_v5 = vld [vmem:[%s394_s2] sm:$0x3] }
  0x32   :  { %148 = vmatpush1.msra.mxu0 %v57_v23  ;;  %v118_v7 = vrot.slane %v113_v5, %v117_v4  ;;  %v122_v8 = vrot.slane %v113_v5, %v121_v6 }
  0x33   :  { %149 = vmatprep.subr.mxu0 %v56_v25 }
  0x34   :  { %150 = vmatpush1.msra.mxu0 %v55_v26 }
  0x35   :  { %151 = vmatprep.subr.mxu0 %v54_v27  ;;  %v216_v27 = vld [vmem:[%s395_s3] sm:$0x3]  ;;  %s309_s3 = scalar_lea.vmem %s253_s9, 256 }
  0x36   :  { %152 = vmatpush1.msra.mxu0 %v53_v28  ;;  %p310_p10 = scmp.ne.s32.totalorder %s253_s9, %s309_s3  ;;  %p315_p12 = scmp.lt.s32.totalorder %s309_s3, %s309_s3 }
  0x37   :  { %153 = vmatprep.subr.mxu0 %v52_v29 }
  0x38   :  { %154 = vmatpush1.msra.mxu0 %v51_v30  ;;  %v221_v30 = vrot.slane %v216_v27, %v117_v4  ;;  %p316_p13 = por %p315_p12, %p314_p11 }
  0x39   :  { %155 = vmatprep.subr.mxu0 %v50_v31  ;;  %v225_v31 = vrot.slane %v216_v27, %v121_v6 }
  0x3a   :  { %156 = vmatpush1.msra.mxu0 %v49_v32  ;;  %p317_p0 = pnand %p316_p13, %p310_p10 }
  0x3b   :  { %157 = vmatprep.subr.mxu0 %v112_v33 }
  0x3c   :  { %158 = vmatpush2.msra.mxu0 %v111_v34 }
  0x3d   :  { %159 = vmatprep.subr.mxu0 %v110_v35 }
  0x3e   :  { %160 = vmatpush2.msra.mxu0 %v109_v36 }
  0x3f   :  { %161 = vmatprep.subr.mxu0 %v108_v37 }
  0x40   :  { %162 = vmatpush2.msra.mxu0 %v107_v38 }
  0x41   :  { %163 = vmatprep.subr.mxu0 %v106_v39 }
  0x42   :  { %164 = vmatpush2.msra.mxu0 %v105_v40 }
  0x43   :  { %165 = vmatprep.subr.mxu0 %v104_v41 }
  0x44   :  { %166 = vmatpush2.msra.mxu0 %v103_v42 }
  0x45   :  { %167 = vmatprep.subr.mxu0 %v102_v43 }
  0x46   :  { %168 = vmatpush2.msra.mxu0 %v101_v44 }
  0x47   :  { %169 = vmatprep.subr.mxu0 %v100_v45 }
  0x48   :  { %170 = vmatpush2.msra.mxu0 %v99_v46 }
  0x49   :  { %171 = vmatprep.subr.mxu0 %v98_v47 }
  0x4a   :  { %172 = vmatpush2.msra.mxu0 %v97_v48 }
  0x4b   :  { %173 = vmatprep.subr.mxu0 %v96_v49 }
  0x4c   :  { %174 = vmatpush2.msra.mxu0 %v95_v50 }
  0x4d   :  { %175 = vmatprep.subr.mxu0 %v94_v51 }
  0x4e   :  { %176 = vmatpush2.msra.mxu0 %v93_v52 }
  0x4f   :  { %177 = vmatprep.subr.mxu0 %v92_v53 }
  0x50   :  { %178 = vmatpush2.msra.mxu0 %v91_v54 }
  0x51   :  { %179 = vmatprep.subr.mxu0 %v90_v55 }
  0x52   :  { %180 = vmatpush2.msra.mxu0 %v89_v56 }
  0x53   :  { %181 = vmatprep.subr.mxu0 %v88_v57 }
  0x54   :  { %182 = vmatpush2.msra.mxu0 %v87_v58 }
  0x55   :  { %183 = vmatprep.subr.mxu0 %v86_v59 }
  0x56   :  { %184 = vmatpush2.msra.mxu0 %v85_v60 }
  0x57   :  { %185 = vmatprep.subr.mxu0 %v84_v61 }
  0x58   :  { %186 = vmatpush2.msra.mxu0 %v83_v62 }
  0x59   :  { %187 = vmatprep.subr.mxu0 %v82_v63 }
  0x5a   :  { %188 = vmatpush2.msra.mxu0 %v81_v0 }
  0x5b   :  { %190 = vmatmul.mubr.f32.vlgmr.msra.gmra.mxu0 %v47_v1 }
 0x11b   :  { %v191_v9 = vpop.f32.mrf.mxu0 }
 0x11c   :  { %v192_v10 = vadd.f32 %v191_v9, %v118_v7 }
 0x11d   :  { %v193_v11 = vpop.f32.mrf.mxu0 }
 0x11e   :  { %v194_v12 = vadd.f32 %v193_v11, %v122_v8  ;;  %v196_v13 = vadd.f32 %v192_v10, %v47_v1 }
 0x120   :  { %v197_v14 = vadd.f32 %v194_v12, %v376_v24  ;;  %v202_v17 = vmul.f32 %v196_v13, %v196_v13  ;;  %v230_v24 = vld [vmem:[%s396_s4] sm:$0x3] }
 0x121   :  { %v235_v35 = vrot.slane %v230_v24, %v117_v4  ;;  %v239_v36 = vrot.slane %v230_v24, %v121_v6 }
 0x122   :  { %v198_v15 = vadd.f32 %v197_v14, %v196_v13  ;;  %v203_v16 = vmul.f32 %v197_v14, %v197_v14 }
 0x124   :  { %199 = vadd.xlane.f32.xlu0 %v198_v15  ;;  %v204_v18 = vadd.f32 %v203_v16, %v202_v17 }
 0x128   :  { %205 = vadd.xlane.f32.xlu0 %v204_v18 }
 0x1ad   :  { %v200_v19 = vpop.xlane.xlu0 %199 }
 0x1ae   :  { %v201_v20 = vmul.f32 0.00390625, %v200_v19 }
 0x1b0   :  { %v208_v22 = vmul.f32 %v201_v20, %v201_v20  ;;  %v212_v28 = vsub.f32 %v196_v13, %v201_v20  ;;  %v213_v29 = vsub.f32 %v197_v14, %v201_v20 }
 0x1b1   :  { %v206_v21 = vpop.xlane.xlu0 %205 }
 0x1b2   :  { %v207_v23 = vmul.f32 0.00390625, %v206_v21 }
 0x1b4   :  { %v209_v25 = vsub.f32 %v207_v23, %v208_v22 }
 0x1b6   :  { %v210_v26 = vadd.f32 1e-05, %v209_v25 }
 0x1b8   :  { %267 = vrsqrt.f32 %v210_v26 }
 0x1c5   :  { %v268_v32 = vpop.eup %267 }
 0x1c6   :  { %v214_v33 = vmul.f32 %v268_v32, %v212_v28  ;;  %v215_v34 = vmul.f32 %v268_v32, %v213_v29 }
 0x1c8   :  { %v228_v37 = vmul.f32 %v221_v30, %v214_v33  ;;  %v229_v38 = vmul.f32 %v225_v31, %v215_v34 }
 0x1ca   :  { %v242_v39 = vadd.f32 %v235_v35, %v228_v37  ;;  %v243_v40 = vadd.f32 %v239_v36, %v229_v38 }
 0x1cc   :  { %244 = vst [vmem:[#allocation7] sm:$0xff] %v242_v39  ;;  %245 = vst [vmem:[#allocation7 + $0x8] sm:$0xff] %v243_v40 }
 0x1cd   :  { %320 = shalt.err (!%p317_p0)
}
 0x1ce   :  { %255 = dma.vmem_to_hbm [thread:$0]  %s253_s9, 256, %s397_s5, [#allocation4]  }
 0x1cf   :  { %333 = dma.done.wait [#allocation4], 256  }
 0x1d0   :  { %334 = vsyncadd [#allocation4], 4294967040 }
 0x1d1   :  { %259 = vsyncpa [#allocation3], 1 }
 0x1d2   :  { %260 = vsyncpa [#allocation6], 1 }
 0x1d3   :  { %261 = vsyncpa [#allocation4], 1 }

// kernel: tpu_custom_call.1
= control target key start
LH: loop header
LB: loop body
LE: loop exit
PB: predicated region body
PF: predicated region fallthrough
CT: control target
= control target key end

     0   :  { %10 = vsyncpa [#allocation3], 0  ;;  %s392_s0 = inlined_call_operand.hbm [shape: f32[8,256], index: 0, kind: input, shape index: {}]   ;;  %s393_s1 = inlined_call_operand.hbm [shape: f32[256,256], index: 1, kind: input, shape index: {}]   ;;  %s394_s2 = inlined_call_operand.vmem [shape: f32[1,256], index: 2, kind: input, shape index: {}]   ;;  %s395_s3 = inlined_call_operand.vmem [shape: f32[1,256], index: 3, kind: input, shape index: {}]   ;;  %s396_s4 = inlined_call_operand.vmem [shape: f32[1,256], index: 4, kind: input, shape index: {}]   ;;  %s397_s5 = inlined_call_operand.hbm [shape: f32[8,256], index: 5, kind: output, shape index: {}]  }
   0x1   :  { %11 = vsyncpa [#allocation6], 0 }
   0x2   :  { %12 = vsyncpa [#allocation4], 0  ;;  %s335_s18 = smov [#allocation2]   ;;  %s336_s20 = smov [#allocation5]  }
   0x3   :  { %s19_s19 = sshll.u32 %s335_s18, 4  ;;  %s28_s21 = sshll.u32 %s336_s20, 4  ;;  %s20_s19 = int_to_ptr.vmem [resolvable:$true] %s19_s19  ;;  %s29_s21 = int_to_ptr.vmem [resolvable:$true] %s28_s21 }
   0x4   :  { %s277_s22 = scalar_lea.vmem %s20_s19, 256  ;;  %p282_p1 = scmp.lt.s32.totalorder %s20_s19, %s20_s19 }
   0x5   :  { %p278_p0 = scmp.ne.s32.totalorder %s20_s19, %s277_s22  ;;  %p283_p2 = scmp.lt.s32.totalorder %s277_s22, %s277_s22 }
   0x7   :  { %p284_p3 = por %p283_p2, %p282_p1 }
   0x9   :  { %p285_p4 = pnand %p284_p3, %p278_p0 }
   0xb   :  { %288 = shalt.err (!%p285_p4)
}
   0xc   :  { %22 = dma.hbm_to_vmem [thread:$0]  %s392_s0, 256, %s20_s19, [#allocation3]  }
   0xd   :  { %s297_s25 = scalar_lea.vmem %s29_s21, 8192  ;;  %p302_p6 = scmp.lt.s32.totalorder %s29_s21, %s29_s21 }
   0xe   :  { %p298_p5 = scmp.ne.s32.totalorder %s29_s21, %s297_s25  ;;  %p303_p7 = scmp.lt.s32.totalorder %s297_s25, %s297_s25 }
  0x10   :  { %p304_p8 = por %p303_p7, %p302_p6 }
  0x12   :  { %p305_p9 = pnand %p304_p8, %p298_p5 }
  0x14   :  { %308 = shalt.err (!%p305_p9)
}
  0x15   :  { %s337_s26 = smov 256   ;;  %s338_s27 = smov 16  }
  0x16   :  { %34 = dma.hbm_to_vmem [thread:$0]  %s393_s1, 8192, %s29_s21, [#allocation6], %s337_s26, %s337_s26, %s338_s27  }
  0x17   :  { %329 = dma.done.wait [#allocation3], 256  }
  0x18   :  { %330 = vsyncadd [#allocation3], 4294967040 }
  0x19   :  { %331 = dma.done.wait [#allocation6], 8192  }
  0x1a   :  { %332 = vsyncadd [#allocation6], 4294959104  ;;  %v80_v0 = vld [vmem:[#allocation5 + $0xf8] sm:$0xff]  ;;  %v79_v1 = vld [vmem:[#allocation5 + $0xf0] sm:$0xff]  ;;  %s339_s8 = smov [#allocation7]  }
  0x1b   :  { %v78_v2 = vld [vmem:[#allocation5 + $0xe8] sm:$0xff]  ;;  %125 = vmatprep.subr.mxu0 %v80_v0  ;;  %v77_v3 = vld [vmem:[#allocation5 + $0xe0] sm:$0xff]  ;;  %v76_v4 = vld [vmem:[#allocation5 + $0xd8] sm:$0xff]  ;;  %s252_s9 = sshll.u32 %s339_s8, 4  ;;  %s253_s9 = int_to_ptr.vmem [resolvable:$true] %s252_s9 }
  0x1c   :  { %126 = vmatpush1.msra.mxu0 %v79_v1  ;;  %v75_v5 = vld [vmem:[#allocation5 + $0xd0] sm:$0xff]  ;;  %v74_v6 = vld [vmem:[#allocation5 + $0xc8] sm:$0xff]  ;;  %v73_v7 = vld [vmem:[#allocation5 + $0xc0] sm:$0xff]  ;;  %p314_p11 = scmp.lt.s32.totalorder %s253_s9, %s253_s9 }
  0x1d   :  { %127 = vmatprep.subr.mxu0 %v78_v2  ;;  %v72_v8 = vld [vmem:[#allocation5 + $0xb8] sm:$0xff]  ;;  %v71_v9 = vld [vmem:[#allocation5 + $0xb0] sm:$0xff]  ;;  %v70_v10 = vld [vmem:[#allocation5 + $0xa8] sm:$0xff]  ;;  %v115_v2 = vlaneseq }
  0x1e   :  { %128 = vmatpush1.msra.mxu0 %v77_v3  ;;  %v69_v11 = vld [vmem:[#allocation5 + $0xa0] sm:$0xff]  ;;  %v68_v12 = vld [vmem:[#allocation5 + $0x98] sm:$0xff]  ;;  %v67_v13 = vld [vmem:[#allocation5 + $0x90] sm:$0xff] }
  0x1f   :  { %129 = vmatprep.subr.mxu0 %v76_v4  ;;  %v66_v14 = vld [vmem:[#allocation5 + $0x88] sm:$0xff]  ;;  %v65_v15 = vld [vmem:[#allocation5 + $0x80] sm:$0xff]  ;;  %v64_v16 = vld [vmem:[#allocation5 + $0x78] sm:$0xff]  ;;  %v116_v3 = vshrl.u32 %v115_v2, 7 }
  0x20   :  { %130 = vmatpush1.msra.mxu0 %v75_v5  ;;  %v63_v17 = vld [vmem:[#allocation5 + $0x70] sm:$0xff]  ;;  %v62_v18 = vld [vmem:[#allocation5 + $0x68] sm:$0xff]  ;;  %v61_v19 = vld [vmem:[#allocation5 + $0x60] sm:$0xff] }
  0x21   :  { %131 = vmatprep.subr.mxu0 %v74_v6  ;;  %v60_v20 = vld [vmem:[#allocation5 + $0x58] sm:$0xff]  ;;  %v59_v21 = vld [vmem:[#allocation5 + $0x50] sm:$0xff]  ;;  %v58_v22 = vld [vmem:[#allocation5 + $0x48] sm:$0xff]  ;;  %v117_v4 = vsub.s32 0, %v116_v3  ;;  %v121_v6 = vsub.s32 1, %v116_v3 }
  0x22   :  { %132 = vmatpush1.msra.mxu0 %v73_v7  ;;  %v57_v23 = vld [vmem:[#allocation5 + $0x40] sm:$0xff]  ;;  %v376_v24 = vld [vmem:[#allocation2 + $0x8] sm:$0xff]  ;;  %v55_v26 = vld [vmem:[#allocation5 + $0x30] sm:$0xff] }
  0x23   :  { %133 = vmatprep.subr.mxu0 %v72_v8  ;;  %v56_v25 = vld [vmem:[#allocation5 + $0x38] sm:$0xff]  ;;  %189 = vmatprep.mubr.f32.mxu0 %v376_v24  ;;  %v54_v27 = vld [vmem:[#allocation5 + $0x28] sm:$0xff]  ;;  %v53_v28 = vld [vmem:[#allocation5 + $0x20] sm:$0xff] }
  0x24   :  { %134 = vmatpush1.msra.mxu0 %v71_v9  ;;  %v52_v29 = vld [vmem:[#allocation5 + $0x18] sm:$0xff]  ;;  %v51_v30 = vld [vmem:[#allocation5 + $0x10] sm:$0xff]  ;;  %v50_v31 = vld [vmem:[#allocation5 + $0x8] sm:$0xff] }
  0x25   :  { %135 = vmatprep.subr.mxu0 %v70_v10  ;;  %v49_v32 = vld [vmem:[#allocation5] sm:$0xff]  ;;  %v112_v33 = vld [vmem:[#allocation5 + $0x1f8] sm:$0xff]  ;;  %v111_v34 = vld [vmem:[#allocation5 + $0x1f0] sm:$0xff] }
  0x26   :  { %136 = vmatpush1.msra.mxu0 %v69_v11  ;;  %v110_v35 = vld [vmem:[#allocation5 + $0x1e8] sm:$0xff]  ;;  %v109_v36 = vld [vmem:[#allocation5 + $0x1e0] sm:$0xff]  ;;  %v108_v37 = vld [vmem:[#allocation5 + $0x1d8] sm:$0xff] }
  0x27   :  { %137 = vmatprep.subr.mxu0 %v68_v12  ;;  %v107_v38 = vld [vmem:[#allocation5 + $0x1d0] sm:$0xff]  ;;  %v106_v39 = vld [vmem:[#allocation5 + $0x1c8] sm:$0xff]  ;;  %v105_v40 = vld [vmem:[#allocation5 + $0x1c0] sm:$0xff] }
  0x28   :  { %138 = vmatpush1.msra.mxu0 %v67_v13  ;;  %v104_v41 = vld [vmem:[#allocation5 + $0x1b8] sm:$0xff]  ;;  %v103_v42 = vld [vmem:[#allocation5 + $0x1b0] sm:$0xff]  ;;  %v102_v43 = vld [vmem:[#allocation5 + $0x1a8] sm:$0xff] }
  0x29   :  { %139 = vmatprep.subr.mxu0 %v66_v14  ;;  %v101_v44 = vld [vmem:[#allocation5 + $0x1a0] sm:$0xff]  ;;  %v100_v45 = vld [vmem:[#allocation5 + $0x198] sm:$0xff]  ;;  %v99_v46 = vld [vmem:[#allocation5 + $0x190] sm:$0xff] }
  0x2a   :  { %140 = vmatpush1.msra.mxu0 %v65_v15  ;;  %v98_v47 = vld [vmem:[#allocation5 + $0x188] sm:$0xff]  ;;  %v97_v48 = vld [vmem:[#allocation5 + $0x180] sm:$0xff]  ;;  %v96_v49 = vld [vmem:[#allocation5 + $0x178] sm:$0xff] }
  0x2b   :  { %141 = vmatprep.subr.mxu0 %v64_v16  ;;  %v95_v50 = vld [vmem:[#allocation5 + $0x170] sm:$0xff]  ;;  %v94_v51 = vld [vmem:[#allocation5 + $0x168] sm:$0xff]  ;;  %v93_v52 = vld [vmem:[#allocation5 + $0x160] sm:$0xff] }
  0x2c   :  { %142 = vmatpush1.msra.mxu0 %v63_v17  ;;  %v92_v53 = vld [vmem:[#allocation5 + $0x158] sm:$0xff]  ;;  %v91_v54 = vld [vmem:[#allocation5 + $0x150] sm:$0xff]  ;;  %v90_v55 = vld [vmem:[#allocation5 + $0x148] sm:$0xff] }
  0x2d   :  { %143 = vmatprep.subr.mxu0 %v62_v18  ;;  %v89_v56 = vld [vmem:[#allocation5 + $0x140] sm:$0xff]  ;;  %v88_v57 = vld [vmem:[#allocation5 + $0x138] sm:$0xff]  ;;  %v87_v58 = vld [vmem:[#allocation5 + $0x130] sm:$0xff] }
  0x2e   :  { %144 = vmatpush1.msra.mxu0 %v61_v19  ;;  %v86_v59 = vld [vmem:[#allocation5 + $0x128] sm:$0xff]  ;;  %v85_v60 = vld [vmem:[#allocation5 + $0x120] sm:$0xff]  ;;  %v84_v61 = vld [vmem:[#allocation5 + $0x118] sm:$0xff] }
  0x2f   :  { %145 = vmatprep.subr.mxu0 %v60_v20  ;;  %v83_v62 = vld [vmem:[#allocation5 + $0x110] sm:$0xff]  ;;  %v82_v63 = vld [vmem:[#allocation5 + $0x108] sm:$0xff]  ;;  %v81_v0 = vld [vmem:[#allocation5 + $0x100] sm:$0xff] }
  0x30   :  { %146 = vmatpush1.msra.mxu0 %v59_v21  ;;  %v47_v1 = vld [vmem:[#allocation2] sm:$0xff] }
  0x31   :  { %147 = vmatprep.subr.mxu0 %v58_v22  ;;  %v113_v5 = vld [vmem:[%s394_s2] sm:$0x3] }
  0x32   :  { %148 = vmatpush1.msra.mxu0 %v57_v23  ;;  %v118_v7 = vrot.slane %v113_v5, %v117_v4  ;;  %v122_v8 = vrot.slane %v113_v5, %v121_v6 }
  0x33   :  { %149 = vmatprep.subr.mxu0 %v56_v25 }
  0x34   :  { %150 = vmatpush1.msra.mxu0 %v55_v26 }
  0x35   :  { %151 = vmatprep.subr.mxu0 %v54_v27  ;;  %v216_v27 = vld [vmem:[%s395_s3] sm:$0x3]  ;;  %s309_s3 = scalar_lea.vmem %s253_s9, 256 }
  0x36   :  { %152 = vmatpush1.msra.mxu0 %v53_v28  ;;  %p310_p10 = scmp.ne.s32.totalorder %s253_s9, %s309_s3  ;;  %p315_p12 = scmp.lt.s32.totalorder %s309_s3, %s309_s3 }
  0x37   :  { %153 = vmatprep.subr.mxu0 %v52_v29 }
  0x38   :  { %154 = vmatpush1.msra.mxu0 %v51_v30  ;;  %v221_v30 = vrot.slane %v216_v27, %v117_v4  ;;  %p316_p13 = por %p315_p12, %p314_p11 }
  0x39   :  { %155 = vmatprep.subr.mxu0 %v50_v31  ;;  %v225_v31 = vrot.slane %v216_v27, %v121_v6 }
  0x3a   :  { %156 = vmatpush1.msra.mxu0 %v49_v32  ;;  %p317_p0 = pnand %p316_p13, %p310_p10 }
  0x3b   :  { %157 = vmatprep.subr.mxu0 %v112_v33 }
  0x3c   :  { %158 = vmatpush2.msra.mxu0 %v111_v34 }
  0x3d   :  { %159 = vmatprep.subr.mxu0 %v110_v35 }
  0x3e   :  { %160 = vmatpush2.msra.mxu0 %v109_v36 }
  0x3f   :  { %161 = vmatprep.subr.mxu0 %v108_v37 }
  0x40   :  { %162 = vmatpush2.msra.mxu0 %v107_v38 }
  0x41   :  { %163 = vmatprep.subr.mxu0 %v106_v39 }
  0x42   :  { %164 = vmatpush2.msra.mxu0 %v105_v40 }
  0x43   :  { %165 = vmatprep.subr.mxu0 %v104_v41 }
  0x44   :  { %166 = vmatpush2.msra.mxu0 %v103_v42 }
  0x45   :  { %167 = vmatprep.subr.mxu0 %v102_v43 }
  0x46   :  { %168 = vmatpush2.msra.mxu0 %v101_v44 }
  0x47   :  { %169 = vmatprep.subr.mxu0 %v100_v45 }
  0x48   :  { %170 = vmatpush2.msra.mxu0 %v99_v46 }
  0x49   :  { %171 = vmatprep.subr.mxu0 %v98_v47 }
  0x4a   :  { %172 = vmatpush2.msra.mxu0 %v97_v48 }
  0x4b   :  { %173 = vmatprep.subr.mxu0 %v96_v49 }
  0x4c   :  { %174 = vmatpush2.msra.mxu0 %v95_v50 }
  0x4d   :  { %175 = vmatprep.subr.mxu0 %v94_v51 }
  0x4e   :  { %176 = vmatpush2.msra.mxu0 %v93_v52 }
  0x4f   :  { %177 = vmatprep.subr.mxu0 %v92_v53 }
  0x50   :  { %178 = vmatpush2.msra.mxu0 %v91_v54 }
  0x51   :  { %179 = vmatprep.subr.mxu0 %v90_v55 }
  0x52   :  { %180 = vmatpush2.msra.mxu0 %v89_v56 }
  0x53   :  { %181 = vmatprep.subr.mxu0 %v88_v57 }
  0x54   :  { %182 = vmatpush2.msra.mxu0 %v87_v58 }
  0x55   :  { %183 = vmatprep.subr.mxu0 %v86_v59 }
  0x56   :  { %184 = vmatpush2.msra.mxu0 %v85_v60 }
  0x57   :  { %185 = vmatprep.subr.mxu0 %v84_v61 }
  0x58   :  { %186 = vmatpush2.msra.mxu0 %v83_v62 }
  0x59   :  { %187 = vmatprep.subr.mxu0 %v82_v63 }
  0x5a   :  { %188 = vmatpush2.msra.mxu0 %v81_v0 }
  0x5b   :  { %190 = vmatmul.mubr.f32.vlgmr.msra.gmra.mxu0 %v47_v1 }
 0x11b   :  { %v191_v9 = vpop.f32.mrf.mxu0 }
 0x11c   :  { %v192_v10 = vadd.f32 %v191_v9, %v118_v7 }
 0x11d   :  { %v193_v11 = vpop.f32.mrf.mxu0 }
 0x11e   :  { %v194_v12 = vadd.f32 %v193_v11, %v122_v8  ;;  %v196_v13 = vadd.f32 %v192_v10, %v47_v1 }
 0x120   :  { %v197_v14 = vadd.f32 %v194_v12, %v376_v24  ;;  %v202_v17 = vmul.f32 %v196_v13, %v196_v13  ;;  %v230_v24 = vld [vmem:[%s396_s4] sm:$0x3] }
 0x121   :  { %v235_v35 = vrot.slane %v230_v24, %v117_v4  ;;  %v239_v36 = vrot.slane %v230_v24, %v121_v6 }
 0x122   :  { %v198_v15 = vadd.f32 %v197_v14, %v196_v13  ;;  %v203_v16 = vmul.f32 %v197_v14, %v197_v14 }
 0x124   :  { %199 = vadd.xlane.f32.xlu0 %v198_v15  ;;  %v204_v18 = vadd.f32 %v203_v16, %v202_v17 }
 0x128   :  { %205 = vadd.xlane.f32.xlu0 %v204_v18 }
 0x1ad   :  { %v200_v19 = vpop.xlane.xlu0 %199 }
 0x1ae   :  { %v201_v20 = vmul.f32 0.00390625, %v200_v19 }
 0x1b0   :  { %v208_v22 = vmul.f32 %v201_v20, %v201_v20  ;;  %v212_v28 = vsub.f32 %v196_v13, %v201_v20  ;;  %v213_v29 = vsub.f32 %v197_v14, %v201_v20 }
 0x1b1   :  { %v206_v21 = vpop.xlane.xlu0 %205 }
 0x1b2   :  { %v207_v23 = vmul.f32 0.00390625, %v206_v21 }
 0x1b4   :  { %v209_v25 = vsub.f32 %v207_v23, %v208_v22 }
 0x1b6   :  { %v210_v26 = vadd.f32 1e-05, %v209_v25 }
 0x1b8   :  { %267 = vrsqrt.f32 %v210_v26 }
 0x1c5   :  { %v268_v32 = vpop.eup %267 }
 0x1c6   :  { %v214_v33 = vmul.f32 %v268_v32, %v212_v28  ;;  %v215_v34 = vmul.f32 %v268_v32, %v213_v29 }
 0x1c8   :  { %v228_v37 = vmul.f32 %v221_v30, %v214_v33  ;;  %v229_v38 = vmul.f32 %v225_v31, %v215_v34 }
 0x1ca   :  { %v242_v39 = vadd.f32 %v235_v35, %v228_v37  ;;  %v243_v40 = vadd.f32 %v239_v36, %v229_v38 }
 0x1cc   :  { %244 = vst [vmem:[#allocation7] sm:$0xff] %v242_v39  ;;  %245 = vst [vmem:[#allocation7 + $0x8] sm:$0xff] %v243_v40 }
 0x1cd   :  { %320 = shalt.err (!%p317_p0)
}
 0x1ce   :  { %255 = dma.vmem_to_hbm [thread:$0]  %s253_s9, 256, %s397_s5, [#allocation4]  }
 0x1cf   :  { %333 = dma.done.wait [#allocation4], 256  }
 0x1d0   :  { %334 = vsyncadd [#allocation4], 4294967040 }
 0x1d1   :  { %259 = vsyncpa [#allocation3], 1 }
 0x1d2   :  { %260 = vsyncpa [#allocation6], 1 }
 0x1d3   :  { %261 = vsyncpa [#allocation4], 1 }

</bundles_post_ra>
